<compile_context>
chip_gen: v6e
topology: v6e:2x2x1
jax: 0.10.0
libtpu: 0.0.40
codegen_flags: <defaults>
</compile_context>

<pallas_src>
import math

import jax
import jax.numpy as jnp
from jax.experimental import pallas as pl
from jax.experimental.pallas import tpu as pltpu

BN_EPS = 0.8
LEAKY_SLOPE = 0.2
LANE = 128     # f32 lane width
SUBLANE = 8    # f32 sublane count


def _round_up(n, m):
    return ((n + m - 1) // m) * m


def _pad2(x, shape, value=0.0):
    pad = ((0, shape[0] - x.shape[0]), (0, shape[1] - x.shape[1]))
    return jnp.pad(x, pad, constant_values=value)


def _leaky_relu(x):
    return jnp.where(x >= 0, x, LEAKY_SLOPE * x)


def _vmem_limit(resident_bytes):
    # Explicit scoped-VMEM limit: resident set + headroom, floored for compiler
    # scratch, capped at v7x's 64 MiB physical per-TC VMEM (smallest chip).
    return int(min(max(resident_bytes + (4 << 20), 32 << 20), 64 << 20))


def _pick_head_tile(hf, bp, zf, mm_isz, out_isz, budget=32 << 20):
    """Largest lane tile dividing hf whose head resident set fits the budget."""
    for tn in (2048, 1024, 512, 256, 128):
        if tn > hf or hf % tn:
            continue
        resident = (bp * zf * mm_isz                                   # h2 (1 buf)
                    + 2 * (zf * tn * mm_isz + tn * 4 + bp * tn * out_isz))
        if resident <= budget:
            return tn
    return 128  # hf is always a multiple of 128


def _make_trunk_kernel(true_batch, batch_p, feat_p, matmul_dtype):
    """Linear -> BatchNorm(batch stats) -> LeakyReLU -> Linear -> LeakyReLU."""
    inv_n = 1.0 / float(true_batch)

    def kernel(z_ref, w1_ref, b1_ref, gamma_ref, beta_ref,
               w2_ref, b2_ref, h2_ref):
        # Linear(z, z): z is pre-cast to matmul_dtype in the wrapper.
        h = jnp.dot(z_ref[...], w1_ref[...],
                    preferred_element_type=jnp.float32) + b1_ref[...]

        # BatchNorm1d(eps=0.8): training-mode biased batch stats over the true
        # batch rows only (padded rows masked out). Two-pass variance in f32.
        row_ids = jax.lax.broadcasted_iota(jnp.int32, (batch_p, feat_p), 0)
        rmask = (row_ids < true_batch).astype(jnp.float32)
        mean = jnp.sum(h * rmask, axis=0, keepdims=True) * inv_n
        d = (h - mean) * rmask
        var = jnp.sum(d * d, axis=0, keepdims=True) * inv_n
        h = (h - mean) * jax.lax.rsqrt(var + BN_EPS)
        h = h * gamma_ref[...] + beta_ref[...]
        h = _leaky_relu(h)

        # Linear(z, z) -> LeakyReLU (no normalization).
        h = jnp.dot(h.astype(matmul_dtype), w2_ref[...],
                    preferred_element_type=jnp.float32) + b2_ref[...]
        # Stored once in matmul_dtype: the head streams it without re-casting.
        h2_ref[...] = _leaky_relu(h).astype(h2_ref.dtype)

    return kernel


def _head_kernel(h2_ref, w3_ref, b3_ref, out_ref):
    """Linear(z, hidden) tile -> Tanh (lane-tiled over hidden)."""
    o = jnp.dot(h2_ref[...], w3_ref[...],
                preferred_element_type=jnp.float32) + b3_ref[...]
    out_ref[...] = jnp.tanh(o).astype(out_ref.dtype)


def _generator_forward_impl(z, params, matmul_dtype, out_dtype, single_buffer):
    (w1, b1, gamma, beta, w2, b2, w3, b3) = params
    batch, z_size = z.shape
    hidden = w3.shape[1]

    mm_isz = jnp.dtype(matmul_dtype).itemsize
    out_isz = jnp.dtype(out_dtype).itemsize
    sublane = SUBLANE * (4 // mm_isz)      # 8 for f32, 16 for bf16 packing

    zf = _round_up(z_size, LANE)           # padded trunk feature width
    hf = _round_up(hidden, LANE)           # padded head output width
    bp = _round_up(batch, sublane)         # padded batch (sublane-pack aligned)

    # Lane/sublane-dense, zero-padded operands; matmul operands pre-cast.
    z_p = _pad2(z, (bp, zf)).astype(matmul_dtype)
    w1_p = _pad2(w1, (zf, zf)).astype(matmul_dtype)
    b1_p = _pad2(b1, (1, zf))
    g_p = _pad2(gamma, (1, zf), value=1.0)
    bt_p = _pad2(beta, (1, zf))
    w2_p = _pad2(w2, (zf, zf)).astype(matmul_dtype)
    b2_p = _pad2(b2, (1, zf))
    w3_p = _pad2(w3, (zf, hf)).astype(matmul_dtype)
    b3_p = _pad2(b3, (1, hf))

    pm = pl.Buffered(1) if single_buffer else None

    def const_spec(shape):
        # Block index never changes across the grid -> single pipeline buffer.
        if pm is None:
            return pl.BlockSpec(shape, lambda j: (0, 0))
        return pl.BlockSpec(shape, lambda j: (0, 0), pipeline_mode=pm)

    # ------------------------ trunk pallas_call ------------------------------
    trunk_in = (z_p, w1_p, b1_p, g_p, bt_p, w2_p, b2_p)
    trunk_bytes = sum(int(a.size) * a.dtype.itemsize for a in trunk_in)
    h2_bytes = bp * zf * mm_isz
    h2 = pl.pallas_call(
        _make_trunk_kernel(batch, bp, zf, matmul_dtype),
        out_shape=jax.ShapeDtypeStruct((bp, zf), matmul_dtype),
        grid=(1,),
        in_specs=[const_spec(a.shape) for a in trunk_in],
        out_specs=pl.BlockSpec((bp, zf), lambda j: (0, 0)),
        compiler_params=pltpu.CompilerParams(
            dimension_semantics=("arbitrary",),
            vmem_limit_bytes=_vmem_limit(trunk_bytes + 2 * h2_bytes)),
        cost_estimate=pl.CostEstimate(
            flops=int(4 * bp * zf * zf),
            transcendentals=int(bp * zf),
            bytes_accessed=int(trunk_bytes + h2_bytes)),
    )(*trunk_in)

    # ------------------------ head pallas_call -------------------------------
    tn = _pick_head_tile(hf, bp, zf, mm_isz, out_isz)
    grid = (hf // tn,)
    head_resident = ((1 if single_buffer else 2) * bp * zf * mm_isz
                     + 2 * (zf * tn * mm_isz + tn * 4 + bp * tn * out_isz))
    head_bytes = (bp * zf * mm_isz + zf * hf * mm_isz + hf * 4
                  + bp * hf * out_isz)

    out_p = pl.pallas_call(
        _head_kernel,
        out_shape=jax.ShapeDtypeStruct((bp, hf), out_dtype),
        grid=grid,
        in_specs=[
            const_spec((bp, zf)),                        # h2 (grid-constant)
            pl.BlockSpec((zf, tn), lambda j: (0, j)),    # w3 lane tile
            pl.BlockSpec((1, tn), lambda j: (0, j)),     # b3 lane tile
        ],
        out_specs=pl.BlockSpec((bp, tn), lambda j: (0, j)),
        compiler_params=pltpu.CompilerParams(
            # Independent head tiles -> shard across TensorCores (v7x megacore).
            dimension_semantics=("parallel",),
            vmem_limit_bytes=_vmem_limit(head_resident)),
        cost_estimate=pl.CostEstimate(
            flops=int(2 * bp * zf * hf),
            transcendentals=int(bp * hf),
            bytes_accessed=int(head_bytes)),
    )(h2, w3_p, b3_p)

    return out_p[:batch, :hidden]


def generator_forward(z, params, matmul_dtype=jnp.bfloat16, out_dtype=jnp.float32):
    try:
        return _generator_forward_impl(z, params, matmul_dtype, out_dtype,
                                       single_buffer=True)
    except Exception:
        # pl.Buffered(1) on grid-constant operands is a pure VMEM optimization;
        # fall back to default double-buffering if this Pallas build rejects it.
        return _generator_forward_impl(z, params, matmul_dtype, out_dtype,
                                       single_buffer=False)


def init_params(key, z_size, hidden_size):
    """Deterministic init mimicking PyTorch nn.Linear default U[-1/sqrt(in), 1/sqrt(in)]."""
    keys = jax.random.split(key, 6)

    def linear(kw, kb, fan_in, fan_out):
        bound = 1.0 / math.sqrt(fan_in)
        w = jax.random.uniform(kw, (fan_in, fan_out), jnp.float32, -bound, bound)
        b = jax.random.uniform(kb, (1, fan_out), jnp.float32, -bound, bound)
        return w, b

    w1, b1 = linear(keys[0], keys[1], z_size, z_size)
    w2, b2 = linear(keys[2], keys[3], z_size, z_size)
    w3, b3 = linear(keys[4], keys[5], z_size, hidden_size)
    gamma = jnp.ones((1, z_size), jnp.float32)
    beta = jnp.zeros((1, z_size), jnp.float32)
    return (w1, b1, gamma, beta, w2, b2, w3, b3)


def reference_forward(z, params, matmul_dtype=jnp.float32):
    """Pure-JAX reference of the same math (same matmul operand dtype)."""
    (w1, b1, gamma, beta, w2, b2, w3, b3) = params

    def mm(x, w):
        return jnp.dot(x.astype(matmul_dtype), w.astype(matmul_dtype),
                       preferred_element_type=jnp.float32)

    h = mm(z, w1) + b1
    mean = jnp.mean(h, axis=0, keepdims=True)
    var = jnp.mean((h - mean) ** 2, axis=0, keepdims=True)
    h = (h - mean) * jax.lax.rsqrt(var + BN_EPS) * gamma + beta
    h = jnp.where(h >= 0, h, LEAKY_SLOPE * h)
    h = mm(h, w2) + b2
    h = jnp.where(h >= 0, h, LEAKY_SLOPE * h)
    h = mm(h, w3) + b3
    return jnp.tanh(h)


if __name__ == "__main__":
    # TODO(synk): BatchNorm running-mean/var buffer updates (training-mode side
    # effect) are not materialized; the forward output does not depend on them.
    # batch deliberately not a multiple of the sublane pack to exercise batch
    # padding + masked BN statistics.
    batch = 6
    z_size = 32
    hidden_size = 64

    key = jax.random.PRNGKey(0)
    k_param, k_z = jax.random.split(key)

    params = init_params(k_param, z_size, hidden_size)
    z = jax.random.normal(k_z, (batch, z_size), jnp.float32)

    # Exact f32 path (PyTorch semantics).
    out_f32 = jax.block_until_ready(
        generator_forward(z, params, matmul_dtype=jnp.float32))
    ref_f32 = reference_forward(z, params, matmul_dtype=jnp.float32)
    assert out_f32.shape == (batch, hidden_size)
    assert jnp.allclose(out_f32, ref_f32, atol=1e-5, rtol=1e-5), \
        float(jnp.max(jnp.abs(out_f32 - ref_f32)))

    # bf16-MXU fast path (default); compared against a matching-precision reference.
    out_bf16 = jax.block_until_ready(
        generator_forward(z, params, matmul_dtype=jnp.bfloat16))
    ref_bf16 = reference_forward(z, params, matmul_dtype=jnp.bfloat16)
    assert out_bf16.shape == (batch, hidden_size)
    assert jnp.allclose(out_bf16, ref_bf16, atol=1e-4, rtol=1e-4), \
        float(jnp.max(jnp.abs(out_bf16 - ref_bf16)))

    print("KERNEL_OK")
</pallas_src>

<mosaic_0001>
module attributes {stable_mosaic.version = 11 : i64} {
  func.func @kernel(%arg0: i32, %arg1: memref<8x128xf32, #tpu.memory_space<vmem>>, %arg2: memref<128x128xf32, #tpu.memory_space<vmem>>, %arg3: memref<1x128xf32, #tpu.memory_space<vmem>>, %arg4: memref<1x128xf32, #tpu.memory_space<vmem>>, %arg5: memref<1x128xf32, #tpu.memory_space<vmem>>, %arg6: memref<128x128xf32, #tpu.memory_space<vmem>>, %arg7: memref<1x128xf32, #tpu.memory_space<vmem>>, %arg8: memref<8x128xf32, #tpu.memory_space<vmem>>) attributes {dimension_semantics = [#tpu.dimension_semantics<arbitrary>], iteration_bounds = array<i64: 1>, scalar_prefetch = 0 : i64, scratch_operands = 0 : i64, tpu.core_type = #tpu.core_type<tc>, window_params = [{pipeline_mode = #tpu.pipeline_mode<synchronous>, transform_indices = @transform_0, window_bounds = array<i64: 8, 128>}, {pipeline_mode = #tpu.pipeline_mode<synchronous>, transform_indices = @transform_1, window_bounds = array<i64: 128, 128>}, {pipeline_mode = #tpu.pipeline_mode<synchronous>, transform_indices = @transform_2, window_bounds = array<i64: 1, 128>}, {pipeline_mode = #tpu.pipeline_mode<synchronous>, transform_indices = @transform_3, window_bounds = array<i64: 1, 128>}, {pipeline_mode = #tpu.pipeline_mode<synchronous>, transform_indices = @transform_4, window_bounds = array<i64: 1, 128>}, {pipeline_mode = #tpu.pipeline_mode<synchronous>, transform_indices = @transform_5, window_bounds = array<i64: 128, 128>}, {pipeline_mode = #tpu.pipeline_mode<synchronous>, transform_indices = @transform_6, window_bounds = array<i64: 1, 128>}, {pipeline_mode = #tpu.pipeline_mode<synchronous>, transform_indices = @transform_7, window_bounds = array<i64: 8, 128>}]} {
    %c0 = arith.constant 0 : index
    %c0_0 = arith.constant 0 : index
    %0 = vector.load %arg1[%c0, %c0_0] : memref<8x128xf32, #tpu.memory_space<vmem>>, vector<8x128xf32>
    %c0_1 = arith.constant 0 : index
    %c0_2 = arith.constant 0 : index
    %1 = vector.load %arg2[%c0_1, %c0_2] : memref<128x128xf32, #tpu.memory_space<vmem>>, vector<128x128xf32>
    %cst = arith.constant dense<0.000000e+00> : vector<8x128xf32>
    %2 = tpu.matmul %0, %1, %cst {dimension_numbers = #tpu.dot_dimension_numbers<[1], [0], [0], [1], [0, 0, 1, 1], [], []>} : vector<8x128xf32>, vector<128x128xf32>, vector<8x128xf32> -> vector<8x128xf32>
    %c0_3 = arith.constant 0 : index
    %c0_4 = arith.constant 0 : index
    %3 = vector.load %arg3[%c0_3, %c0_4] : memref<1x128xf32, #tpu.memory_space<vmem>>, vector<1x128xf32>
    %4 = vector.broadcast %3 : vector<1x128xf32> to vector<8x128xf32>
    %5 = arith.addf %2, %4 : vector<8x128xf32>
    %6 = tpu.iota {dimensions = array<i32: 0>} : vector<8x128xi32>
    %c6_i32 = arith.constant 6 : i32
    %7 = vector.broadcast %c6_i32 : i32 to vector<8x128xi32>
    %8 = arith.cmpi slt, %6, %7 : vector<8x128xi32>
    %9 = arith.extui %8 : vector<8x128xi1> to vector<8x128xi32>
    %10 = arith.sitofp %9 : vector<8x128xi32> to vector<8x128xf32>
    %11 = arith.mulf %5, %10 : vector<8x128xf32>
    %cst_5 = arith.constant dense<0.000000e+00> : vector<128xf32>
    %12 = vector.multi_reduction <add>, %11, %cst_5 [0] : vector<8x128xf32> to vector<128xf32>
    %13 = vector.shape_cast %12 : vector<128xf32> to vector<1x128xf32>
    %cst_6 = arith.constant 0.166666672 : f32
    %14 = vector.broadcast %cst_6 : f32 to vector<1x128xf32>
    %15 = arith.mulf %13, %14 : vector<1x128xf32>
    %16 = vector.broadcast %15 : vector<1x128xf32> to vector<8x128xf32>
    %17 = arith.subf %5, %16 : vector<8x128xf32>
    %18 = arith.mulf %17, %10 : vector<8x128xf32>
    %19 = arith.mulf %18, %18 : vector<8x128xf32>
    %cst_7 = arith.constant dense<0.000000e+00> : vector<128xf32>
    %20 = vector.multi_reduction <add>, %19, %cst_7 [0] : vector<8x128xf32> to vector<128xf32>
    %21 = vector.shape_cast %20 : vector<128xf32> to vector<1x128xf32>
    %cst_8 = arith.constant 0.166666672 : f32
    %22 = vector.broadcast %cst_8 : f32 to vector<1x128xf32>
    %23 = arith.mulf %21, %22 : vector<1x128xf32>
    %24 = vector.broadcast %15 : vector<1x128xf32> to vector<8x128xf32>
    %25 = arith.subf %5, %24 : vector<8x128xf32>
    %cst_9 = arith.constant 8.000000e-01 : f32
    %26 = vector.broadcast %cst_9 : f32 to vector<1x128xf32>
    %27 = arith.addf %23, %26 : vector<1x128xf32>
    %28 = math.rsqrt %27 : vector<1x128xf32>
    %29 = vector.broadcast %28 : vector<1x128xf32> to vector<8x128xf32>
    %30 = arith.mulf %25, %29 : vector<8x128xf32>
    %c0_10 = arith.constant 0 : index
    %c0_11 = arith.constant 0 : index
    %31 = vector.load %arg4[%c0_10, %c0_11] : memref<1x128xf32, #tpu.memory_space<vmem>>, vector<1x128xf32>
    %32 = vector.broadcast %31 : vector<1x128xf32> to vector<8x128xf32>
    %33 = arith.mulf %30, %32 : vector<8x128xf32>
    %c0_12 = arith.constant 0 : index
    %c0_13 = arith.constant 0 : index
    %34 = vector.load %arg5[%c0_12, %c0_13] : memref<1x128xf32, #tpu.memory_space<vmem>>, vector<1x128xf32>
    %35 = vector.broadcast %34 : vector<1x128xf32> to vector<8x128xf32>
    %36 = arith.addf %33, %35 : vector<8x128xf32>
    %cst_14 = arith.constant 0.000000e+00 : f32
    %37 = vector.broadcast %cst_14 : f32 to vector<8x128xf32>
    %38 = arith.cmpf oge, %36, %37 : vector<8x128xf32>
    %cst_15 = arith.constant 2.000000e-01 : f32
    %39 = vector.broadcast %cst_15 : f32 to vector<8x128xf32>
    %40 = arith.mulf %39, %36 : vector<8x128xf32>
    %41 = arith.select %38, %36, %40 : vector<8x128xi1>, vector<8x128xf32>
    %c0_16 = arith.constant 0 : index
    %c0_17 = arith.constant 0 : index
    %42 = vector.load %arg6[%c0_16, %c0_17] : memref<128x128xf32, #tpu.memory_space<vmem>>, vector<128x128xf32>
    %cst_18 = arith.constant dense<0.000000e+00> : vector<8x128xf32>
    %43 = tpu.matmul %41, %42, %cst_18 {dimension_numbers = #tpu.dot_dimension_numbers<[1], [0], [0], [1], [0, 0, 1, 1], [], []>} : vector<8x128xf32>, vector<128x128xf32>, vector<8x128xf32> -> vector<8x128xf32>
    %c0_19 = arith.constant 0 : index
    %c0_20 = arith.constant 0 : index
    %44 = vector.load %arg7[%c0_19, %c0_20] : memref<1x128xf32, #tpu.memory_space<vmem>>, vector<1x128xf32>
    %45 = vector.broadcast %44 : vector<1x128xf32> to vector<8x128xf32>
    %46 = arith.addf %43, %45 : vector<8x128xf32>
    %cst_21 = arith.constant 0.000000e+00 : f32
    %47 = vector.broadcast %cst_21 : f32 to vector<8x128xf32>
    %48 = arith.cmpf oge, %46, %47 : vector<8x128xf32>
    %cst_22 = arith.constant 2.000000e-01 : f32
    %49 = vector.broadcast %cst_22 : f32 to vector<8x128xf32>
    %50 = arith.mulf %49, %46 : vector<8x128xf32>
    %51 = arith.select %48, %46, %50 : vector<8x128xi1>, vector<8x128xf32>
    %c0_23 = arith.constant 0 : index
    %c0_24 = arith.constant 0 : index
    %52 = vector.load %arg8[%c0_23, %c0_24] : memref<8x128xf32, #tpu.memory_space<vmem>>, vector<8x128xf32>
    tpu.vector_store %arg8[%c0_23, %c0_24], %51 {strides = array<i32>} : memref<8x128xf32, #tpu.memory_space<vmem>>, vector<8x128xf32>,
    return
  }
  func.func @transform_0(%arg0: i32) -> (i32, i32) {
    %c0_i32 = arith.constant 0 : i32
    %c0_i32_0 = arith.constant 0 : i32
    %c0_i32_1 = arith.constant 0 : i32
    return %c0_i32, %c0_i32_0 : i32, i32
  }
  func.func @transform_1(%arg0: i32) -> (i32, i32) {
    %c0_i32 = arith.constant 0 : i32
    %c0_i32_0 = arith.constant 0 : i32
    %c0_i32_1 = arith.constant 0 : i32
    return %c0_i32, %c0_i32_0 : i32, i32
  }
  func.func @transform_2(%arg0: i32) -> (i32, i32) {
    %c0_i32 = arith.constant 0 : i32
    %c0_i32_0 = arith.constant 0 : i32
    %c0_i32_1 = arith.constant 0 : i32
    return %c0_i32, %c0_i32_0 : i32, i32
  }
  func.func @transform_3(%arg0: i32) -> (i32, i32) {
    %c0_i32 = arith.constant 0 : i32
    %c0_i32_0 = arith.constant 0 : i32
    %c0_i32_1 = arith.constant 0 : i32
    return %c0_i32, %c0_i32_0 : i32, i32
  }
  func.func @transform_4(%arg0: i32) -> (i32, i32) {
    %c0_i32 = arith.constant 0 : i32
    %c0_i32_0 = arith.constant 0 : i32
    %c0_i32_1 = arith.constant 0 : i32
    return %c0_i32, %c0_i32_0 : i32, i32
  }
  func.func @transform_5(%arg0: i32) -> (i32, i32) {
    %c0_i32 = arith.constant 0 : i32
    %c0_i32_0 = arith.constant 0 : i32
    %c0_i32_1 = arith.constant 0 : i32
    return %c0_i32, %c0_i32_0 : i32, i32
  }
  func.func @transform_6(%arg0: i32) -> (i32, i32) {
    %c0_i32 = arith.constant 0 : i32
    %c0_i32_0 = arith.constant 0 : i32
    %c0_i32_1 = arith.constant 0 : i32
    return %c0_i32, %c0_i32_0 : i32, i32
  }
  func.func @transform_7(%arg0: i32) -> (i32, i32) {
    %c0_i32 = arith.constant 0 : i32
    %c0_i32_0 = arith.constant 0 : i32
    %c0_i32_1 = arith.constant 0 : i32
    return %c0_i32, %c0_i32_0 : i32, i32
  }
}

module attributes {stable_mosaic.version = 11 : i64} {
  func.func @kernel(%arg0: i32, %arg1: memref<8x128xf32, #tpu.memory_space<vmem>>, %arg2: memref<128x128xf32, #tpu.memory_space<vmem>>, %arg3: memref<1x128xf32, #tpu.memory_space<vmem>>, %arg4: memref<1x128xf32, #tpu.memory_space<vmem>>, %arg5: memref<1x128xf32, #tpu.memory_space<vmem>>, %arg6: memref<128x128xf32, #tpu.memory_space<vmem>>, %arg7: memref<1x128xf32, #tpu.memory_space<vmem>>, %arg8: memref<8x128xf32, #tpu.memory_space<vmem>>) attributes {dimension_semantics = [#tpu.dimension_semantics<arbitrary>], iteration_bounds = array<i64: 1>, scalar_prefetch = 0 : i64, scratch_operands = 0 : i64, tpu.core_type = #tpu.core_type<tc>, window_params = [{pipeline_mode = #tpu.pipeline_mode<synchronous>, transform_indices = @transform_0, window_bounds = array<i64: 8, 128>}, {pipeline_mode = #tpu.pipeline_mode<synchronous>, transform_indices = @transform_1, window_bounds = array<i64: 128, 128>}, {pipeline_mode = #tpu.pipeline_mode<synchronous>, transform_indices = @transform_2, window_bounds = array<i64: 1, 128>}, {pipeline_mode = #tpu.pipeline_mode<synchronous>, transform_indices = @transform_3, window_bounds = array<i64: 1, 128>}, {pipeline_mode = #tpu.pipeline_mode<synchronous>, transform_indices = @transform_4, window_bounds = array<i64: 1, 128>}, {pipeline_mode = #tpu.pipeline_mode<synchronous>, transform_indices = @transform_5, window_bounds = array<i64: 128, 128>}, {pipeline_mode = #tpu.pipeline_mode<synchronous>, transform_indices = @transform_6, window_bounds = array<i64: 1, 128>}, {pipeline_mode = #tpu.pipeline_mode<synchronous>, transform_indices = @transform_7, window_bounds = array<i64: 8, 128>}]} {
    %c0 = arith.constant 0 : index
    %c0_0 = arith.constant 0 : index
    %0 = vector.load %arg1[%c0, %c0_0] : memref<8x128xf32, #tpu.memory_space<vmem>>, vector<8x128xf32>
    %c0_1 = arith.constant 0 : index
    %c0_2 = arith.constant 0 : index
    %1 = vector.load %arg2[%c0_1, %c0_2] : memref<128x128xf32, #tpu.memory_space<vmem>>, vector<128x128xf32>
    %cst = arith.constant dense<0.000000e+00> : vector<8x128xf32>
    %2 = tpu.matmul %0, %1, %cst {dimension_numbers = #tpu.dot_dimension_numbers<[1], [0], [0], [1], [0, 0, 1, 1], [], []>} : vector<8x128xf32>, vector<128x128xf32>, vector<8x128xf32> -> vector<8x128xf32>
    %c0_3 = arith.constant 0 : index
    %c0_4 = arith.constant 0 : index
    %3 = vector.load %arg3[%c0_3, %c0_4] : memref<1x128xf32, #tpu.memory_space<vmem>>, vector<1x128xf32>
    %4 = vector.broadcast %3 : vector<1x128xf32> to vector<8x128xf32>
    %5 = arith.addf %2, %4 : vector<8x128xf32>
    %6 = tpu.iota {dimensions = array<i32: 0>} : vector<8x128xi32>
    %c6_i32 = arith.constant 6 : i32
    %7 = vector.broadcast %c6_i32 : i32 to vector<8x128xi32>
    %8 = arith.cmpi slt, %6, %7 : vector<8x128xi32>
    %9 = arith.extui %8 : vector<8x128xi1> to vector<8x128xi32>
    %10 = arith.sitofp %9 : vector<8x128xi32> to vector<8x128xf32>
    %11 = arith.mulf %5, %10 : vector<8x128xf32>
    %cst_5 = arith.constant dense<0.000000e+00> : vector<128xf32>
    %12 = vector.multi_reduction <add>, %11, %cst_5 [0] : vector<8x128xf32> to vector<128xf32>
    %13 = vector.shape_cast %12 : vector<128xf32> to vector<1x128xf32>
    %cst_6 = arith.constant 0.166666672 : f32
    %14 = vector.broadcast %cst_6 : f32 to vector<1x128xf32>
    %15 = arith.mulf %13, %14 : vector<1x128xf32>
    %16 = vector.broadcast %15 : vector<1x128xf32> to vector<8x128xf32>
    %17 = arith.subf %5, %16 : vector<8x128xf32>
    %18 = arith.mulf %17, %10 : vector<8x128xf32>
    %19 = arith.mulf %18, %18 : vector<8x128xf32>
    %cst_7 = arith.constant dense<0.000000e+00> : vector<128xf32>
    %20 = vector.multi_reduction <add>, %19, %cst_7 [0] : vector<8x128xf32> to vector<128xf32>
    %21 = vector.shape_cast %20 : vector<128xf32> to vector<1x128xf32>
    %cst_8 = arith.constant 0.166666672 : f32
    %22 = vector.broadcast %cst_8 : f32 to vector<1x128xf32>
    %23 = arith.mulf %21, %22 : vector<1x128xf32>
    %24 = vector.broadcast %15 : vector<1x128xf32> to vector<8x128xf32>
    %25 = arith.subf %5, %24 : vector<8x128xf32>
    %cst_9 = arith.constant 8.000000e-01 : f32
    %26 = vector.broadcast %cst_9 : f32 to vector<1x128xf32>
    %27 = arith.addf %23, %26 : vector<1x128xf32>
    %28 = math.rsqrt %27 : vector<1x128xf32>
    %29 = vector.broadcast %28 : vector<1x128xf32> to vector<8x128xf32>
    %30 = arith.mulf %25, %29 : vector<8x128xf32>
    %c0_10 = arith.constant 0 : index
    %c0_11 = arith.constant 0 : index
    %31 = vector.load %arg4[%c0_10, %c0_11] : memref<1x128xf32, #tpu.memory_space<vmem>>, vector<1x128xf32>
    %32 = vector.broadcast %31 : vector<1x128xf32> to vector<8x128xf32>
    %33 = arith.mulf %30, %32 : vector<8x128xf32>
    %c0_12 = arith.constant 0 : index
    %c0_13 = arith.constant 0 : index
    %34 = vector.load %arg5[%c0_12, %c0_13] : memref<1x128xf32, #tpu.memory_space<vmem>>, vector<1x128xf32>
    %35 = vector.broadcast %34 : vector<1x128xf32> to vector<8x128xf32>
    %36 = arith.addf %33, %35 : vector<8x128xf32>
    %cst_14 = arith.constant 0.000000e+00 : f32
    %37 = vector.broadcast %cst_14 : f32 to vector<8x128xf32>
    %38 = arith.cmpf oge, %36, %37 : vector<8x128xf32>
    %cst_15 = arith.constant 2.000000e-01 : f32
    %39 = vector.broadcast %cst_15 : f32 to vector<8x128xf32>
    %40 = arith.mulf %39, %36 : vector<8x128xf32>
    %41 = arith.select %38, %36, %40 : vector<8x128xi1>, vector<8x128xf32>
    %c0_16 = arith.constant 0 : index
    %c0_17 = arith.constant 0 : index
    %42 = vector.load %arg6[%c0_16, %c0_17] : memref<128x128xf32, #tpu.memory_space<vmem>>, vector<128x128xf32>
    %cst_18 = arith.constant dense<0.000000e+00> : vector<8x128xf32>
    %43 = tpu.matmul %41, %42, %cst_18 {dimension_numbers = #tpu.dot_dimension_numbers<[1], [0], [0], [1], [0, 0, 1, 1], [], []>} : vector<8x128xf32>, vector<128x128xf32>, vector<8x128xf32> -> vector<8x128xf32>
    %c0_19 = arith.constant 0 : index
    %c0_20 = arith.constant 0 : index
    %44 = vector.load %arg7[%c0_19, %c0_20] : memref<1x128xf32, #tpu.memory_space<vmem>>, vector<1x128xf32>
    %45 = vector.broadcast %44 : vector<1x128xf32> to vector<8x128xf32>
    %46 = arith.addf %43, %45 : vector<8x128xf32>
    %cst_21 = arith.constant 0.000000e+00 : f32
    %47 = vector.broadcast %cst_21 : f32 to vector<8x128xf32>
    %48 = arith.cmpf oge, %46, %47 : vector<8x128xf32>
    %cst_22 = arith.constant 2.000000e-01 : f32
    %49 = vector.broadcast %cst_22 : f32 to vector<8x128xf32>
    %50 = arith.mulf %49, %46 : vector<8x128xf32>
    %51 = arith.select %48, %46, %50 : vector<8x128xi1>, vector<8x128xf32>
    %c0_23 = arith.constant 0 : index
    %c0_24 = arith.constant 0 : index
    %52 = vector.load %arg8[%c0_23, %c0_24] : memref<8x128xf32, #tpu.memory_space<vmem>>, vector<8x128xf32>
    tpu.vector_store %arg8[%c0_23, %c0_24], %51 {strides = array<i32>} : memref<8x128xf32, #tpu.memory_space<vmem>>, vector<8x128xf32>,
    return
  }
  func.func @transform_0(%arg0: i32) -> (i32, i32) {
    %c0_i32 = arith.constant 0 : i32
    %c0_i32_0 = arith.constant 0 : i32
    %c0_i32_1 = arith.constant 0 : i32
    return %c0_i32, %c0_i32_0 : i32, i32
  }
  func.func @transform_1(%arg0: i32) -> (i32, i32) {
    %c0_i32 = arith.constant 0 : i32
    %c0_i32_0 = arith.constant 0 : i32
    %c0_i32_1 = arith.constant 0 : i32
    return %c0_i32, %c0_i32_0 : i32, i32
  }
  func.func @transform_2(%arg0: i32) -> (i32, i32) {
    %c0_i32 = arith.constant 0 : i32
    %c0_i32_0 = arith.constant 0 : i32
    %c0_i32_1 = arith.constant 0 : i32
    return %c0_i32, %c0_i32_0 : i32, i32
  }
  func.func @transform_3(%arg0: i32) -> (i32, i32) {
    %c0_i32 = arith.constant 0 : i32
    %c0_i32_0 = arith.constant 0 : i32
    %c0_i32_1 = arith.constant 0 : i32
    return %c0_i32, %c0_i32_0 : i32, i32
  }
  func.func @transform_4(%arg0: i32) -> (i32, i32) {
    %c0_i32 = arith.constant 0 : i32
    %c0_i32_0 = arith.constant 0 : i32
    %c0_i32_1 = arith.constant 0 : i32
    return %c0_i32, %c0_i32_0 : i32, i32
  }
  func.func @transform_5(%arg0: i32) -> (i32, i32) {
    %c0_i32 = arith.constant 0 : i32
    %c0_i32_0 = arith.constant 0 : i32
    %c0_i32_1 = arith.constant 0 : i32
    return %c0_i32, %c0_i32_0 : i32, i32
  }
  func.func @transform_6(%arg0: i32) -> (i32, i32) {
    %c0_i32 = arith.constant 0 : i32
    %c0_i32_0 = arith.constant 0 : i32
    %c0_i32_1 = arith.constant 0 : i32
    return %c0_i32, %c0_i32_0 : i32, i32
  }
  func.func @transform_7(%arg0: i32) -> (i32, i32) {
    %c0_i32 = arith.constant 0 : i32
    %c0_i32_0 = arith.constant 0 : i32
    %c0_i32_1 = arith.constant 0 : i32
    return %c0_i32, %c0_i32_0 : i32, i32
  }
}

</mosaic_0001>

<bundles_post_ra>
// kernel: tpu_custom_call.1
= control target key start
LH: loop header
LB: loop body
LE: loop exit
PB: predicated region body
PF: predicated region fallthrough
CT: control target
= control target key end

     0   :  { %12 = vsyncpa [#allocation3], 0  ;;  %s630_s0 = inlined_call_operand.hbm [shape: f32[8,128], index: 0, kind: input, shape index: {}]   ;;  %s631_s1 = inlined_call_operand.hbm [shape: f32[128,128], index: 1, kind: input, shape index: {}]   ;;  %s632_s2 = inlined_call_operand.vmem [shape: f32[1,128], index: 2, kind: input, shape index: {}]   ;;  %s633_s3 = inlined_call_operand.vmem [shape: f32[1,128], index: 3, kind: input, shape index: {}]   ;;  %s634_s4 = inlined_call_operand.vmem [shape: f32[1,128], index: 4, kind: input, shape index: {}]   ;;  %s635_s5 = inlined_call_operand.hbm [shape: f32[128,128], index: 5, kind: input, shape index: {}]   ;;  %s636_s6 = inlined_call_operand.vmem [shape: f32[1,128], index: 6, kind: input, shape index: {}]   ;;  %s637_s7 = inlined_call_operand.hbm [shape: f32[8,128], index: 7, kind: output, shape index: {}]  }
   0x1   :  { %13 = vsyncpa [#allocation6], 0 }
   0x2   :  { %14 = vsyncpa [#allocation4], 0  ;;  %s523_s24 = smov [#allocation5]  }
   0x3   :  { %s30_s25 = sshll.u32 %s523_s24, 4  ;;  %s31_s25 = int_to_ptr.vmem [resolvable:$true] %s30_s25 }
   0x4   :  { %s445_s26 = scalar_lea.vmem %s31_s25, 2048  ;;  %p450_p1 = scmp.lt.s32.totalorder %s31_s25, %s31_s25 }
   0x5   :  { %p446_p0 = scmp.ne.s32.totalorder %s31_s25, %s445_s26  ;;  %p451_p2 = scmp.lt.s32.totalorder %s445_s26, %s445_s26 }
   0x7   :  { %p452_p3 = por %p451_p2, %p450_p1 }
   0x9   :  { %p453_p4 = pnand %p452_p3, %p446_p0 }
   0xb   :  { %456 = shalt.err (!%p453_p4)
}
   0xc   :  { %s524_s27 = smov 128   ;;  %s525_s28 = smov 8  }
   0xd   :  { %36 = dma.hbm_to_vmem [thread:$0]  %s631_s1, 2048, %s31_s25, [#allocation6], %s524_s27, %s524_s27, %s525_s28  }
   0xe   :  { %s526_s8 = smov [#allocation2]   ;;  %s527_s10 = smov [#allocation7]  }
   0xf   :  { %s21_s9 = sshll.u32 %s526_s8, 4  ;;  %s48_s11 = sshll.u32 %s527_s10, 4  ;;  %s22_s9 = int_to_ptr.vmem [resolvable:$true] %s21_s9  ;;  %s49_s11 = int_to_ptr.vmem [resolvable:$true] %s48_s11 }
  0x10   :  { %s465_s12 = scalar_lea.vmem %s22_s9, 128  ;;  %p470_p6 = scmp.lt.s32.totalorder %s22_s9, %s22_s9 }
  0x11   :  { %p466_p5 = scmp.ne.s32.totalorder %s22_s9, %s465_s12  ;;  %p471_p7 = scmp.lt.s32.totalorder %s465_s12, %s465_s12 }
  0x13   :  { %p472_p8 = por %p471_p7, %p470_p6 }
  0x15   :  { %p473_p9 = pnand %p472_p8, %p466_p5 }
  0x17   :  { %476 = shalt.err (!%p473_p9)
}
  0x18   :  { %24 = dma.hbm_to_vmem [thread:$0]  %s630_s0, 128, %s22_s9, [#allocation3]  }
  0x19   :  { %s485_s15 = scalar_lea.vmem %s49_s11, 2048  ;;  %p490_p11 = scmp.lt.s32.totalorder %s49_s11, %s49_s11 }
  0x1a   :  { %p486_p10 = scmp.ne.s32.totalorder %s49_s11, %s485_s15  ;;  %p491_p12 = scmp.lt.s32.totalorder %s485_s15, %s485_s15 }
  0x1c   :  { %p492_p13 = por %p491_p12, %p490_p11 }
  0x1e   :  { %p493_p0 = pnand %p492_p13, %p486_p10 }
  0x20   :  { %496 = shalt.err (!%p493_p0)
}
  0x21   :  { %54 = dma.hbm_to_vmem [thread:$0]  %s635_s5, 2048, %s49_s11, [#allocation6], %s524_s27, %s524_s27, %s525_s28  }
  0x22   :  { %517 = dma.done.wait [#allocation3], 128  }
  0x23   :  { %518 = vsyncadd [#allocation3], 4294967168 }
  0x24   :  { %519 = dma.done.wait [#allocation6], 4096  }
  0x25   :  { %520 = vsyncadd [#allocation6], 4294963200  ;;  %v528_v0 = vmov 0.0   ;;  %vm529_vm0 = vmmov 0   ;;  %v82_v1 = vld [vmem:[#allocation5 + $0x78] sm:$0xff]  ;;  %v81_v2 = vld [vmem:[#allocation5 + $0x70] sm:$0xff]  ;;  %v160_v34 = vlaneseq }
  0x26   :  { %357 = vmatprep.subr.mxu0 %v528_v0  ;;  %389 = vmatprep.mubr.msk.f32.mxu0 %vm529_vm0, %v528_v0  ;;  %v80_v3 = vld [vmem:[#allocation5 + $0x68] sm:$0xff]  ;;  %v79_v4 = vld [vmem:[#allocation5 + $0x60] sm:$0xff]  ;;  %v78_v5 = vld [vmem:[#allocation5 + $0x58] sm:$0xff]  ;;  %s530_s22 = smov [#allocation8]  }
  0x27   :  { %392 = vmatprep.subr.mxu1 %v528_v0  ;;  %424 = vmatprep.mubr.msk.f32.mxu1 %vm529_vm0, %v528_v0  ;;  %v77_v6 = vld [vmem:[#allocation5 + $0x50] sm:$0xff]  ;;  %v76_v7 = vld [vmem:[#allocation5 + $0x48] sm:$0xff]  ;;  %v75_v8 = vld [vmem:[#allocation5 + $0x40] sm:$0xff]  ;;  %v161_v35 = vshrl.u32 %v160_v34, 7  ;;  %s308_s23 = sshll.u32 %s530_s22, 4  ;;  %s309_s23 = int_to_ptr.vmem [resolvable:$true] %s308_s23 }
  0x28   :  { %358 = vmatpush3.msra.mxu0 %v82_v1  ;;  %v74_v9 = vld [vmem:[#allocation5 + $0x38] sm:$0xff]  ;;  %v73_v10 = vld [vmem:[#allocation5 + $0x30] sm:$0xff]  ;;  %v72_v11 = vld [vmem:[#allocation5 + $0x28] sm:$0xff]  ;;  %p502_p2 = scmp.lt.s32.totalorder %s309_s23, %s309_s23 }
  0x29   :  { %359 = vmatprep.subr.mxu0 %v528_v0  ;;  %v71_v12 = vld [vmem:[#allocation5 + $0x20] sm:$0xff]  ;;  %v70_v13 = vld [vmem:[#allocation5 + $0x18] sm:$0xff]  ;;  %v69_v14 = vld [vmem:[#allocation5 + $0x10] sm:$0xff]  ;;  %vm162_vm1 = vcmp.lt.s32.totalorder %v161_v35, 6 }
  0x2a   :  { %360 = vmatpush3.msra.mxu0 %v81_v2  ;;  %v68_v15 = vld [vmem:[#allocation5 + $0x8] sm:$0xff]  ;;  %v67_v16 = vld [vmem:[#allocation5] sm:$0xff]  ;;  %v66_v17 = vld [vmem:[#allocation2] sm:$0xff]  ;;  %v319_v38 = vsel %vm162_vm1, 1.0, %v528_v0 }
  0x2b   :  { %361 = vmatprep.subr.mxu0 %v528_v0  ;;  %v220_v18 = vld [vmem:[#allocation7 + $0x78] sm:$0xff]  ;;  %v219_v19 = vld [vmem:[#allocation7 + $0x70] sm:$0xff]  ;;  %v218_v20 = vld [vmem:[#allocation7 + $0x68] sm:$0xff] }
  0x2c   :  { %362 = vmatpush3.msra.mxu0 %v80_v3  ;;  %393 = vmatpush3.msra.mxu1 %v220_v18  ;;  %v217_v21 = vld [vmem:[#allocation7 + $0x60] sm:$0xff]  ;;  %v216_v22 = vld [vmem:[#allocation7 + $0x58] sm:$0xff]  ;;  %v215_v23 = vld [vmem:[#allocation7 + $0x50] sm:$0xff] }
  0x2d   :  { %363 = vmatprep.subr.mxu0 %v528_v0  ;;  %394 = vmatprep.subr.mxu1 %v528_v0  ;;  %v214_v24 = vld [vmem:[#allocation7 + $0x48] sm:$0xff]  ;;  %v213_v25 = vld [vmem:[#allocation7 + $0x40] sm:$0xff]  ;;  %v212_v26 = vld [vmem:[#allocation7 + $0x38] sm:$0xff] }
  0x2e   :  { %364 = vmatpush3.msra.mxu0 %v79_v4  ;;  %395 = vmatpush3.msra.mxu1 %v219_v19  ;;  %v211_v27 = vld [vmem:[#allocation7 + $0x30] sm:$0xff]  ;;  %v210_v28 = vld [vmem:[#allocation7 + $0x28] sm:$0xff]  ;;  %v209_v29 = vld [vmem:[#allocation7 + $0x20] sm:$0xff] }
  0x2f   :  { %365 = vmatprep.subr.mxu0 %v528_v0  ;;  %396 = vmatprep.subr.mxu1 %v528_v0  ;;  %v208_v30 = vld [vmem:[#allocation7 + $0x18] sm:$0xff]  ;;  %v207_v31 = vld [vmem:[#allocation7 + $0x10] sm:$0xff]  ;;  %v206_v32 = vld [vmem:[#allocation7 + $0x8] sm:$0xff] }
  0x30   :  { %366 = vmatpush3.msra.mxu0 %v78_v5  ;;  %397 = vmatpush3.msra.mxu1 %v218_v20  ;;  %v205_v33 = vld [vmem:[#allocation7] sm:$0xff]  ;;  %v318_v36 = vld [vmem:[%s632_s2] ss:$0 sm:$0xff] }
  0x31   :  { %367 = vmatprep.subr.mxu0 %v528_v0  ;;  %398 = vmatprep.subr.mxu1 %v528_v0  ;;  %v320_v61 = vld [vmem:[%s633_s3] ss:$0 sm:$0xff]  ;;  %s497_s3 = scalar_lea.vmem %s309_s23, 128 }
  0x32   :  { %368 = vmatpush3.msra.mxu0 %v77_v6  ;;  %399 = vmatpush3.msra.mxu1 %v217_v21  ;;  %v321_v63 = vld [vmem:[%s634_s4] ss:$0 sm:$0xff]  ;;  %p498_p1 = scmp.ne.s32.totalorder %s309_s23, %s497_s3  ;;  %p503_p3 = scmp.lt.s32.totalorder %s497_s3, %s497_s3 }
  0x33   :  { %369 = vmatprep.subr.mxu0 %v528_v0  ;;  %400 = vmatprep.subr.mxu1 %v528_v0  ;;  %v322_v4 = vld [vmem:[%s636_s6] ss:$0 sm:$0xff] }
  0x34   :  { %370 = vmatpush3.msra.mxu0 %v76_v7  ;;  %401 = vmatpush3.msra.mxu1 %v216_v22  ;;  %p504_p4 = por %p503_p3, %p502_p2 }
  0x35   :  { %371 = vmatprep.subr.mxu0 %v528_v0  ;;  %402 = vmatprep.subr.mxu1 %v528_v0 }
  0x36   :  { %372 = vmatpush3.msra.mxu0 %v75_v8  ;;  %403 = vmatpush3.msra.mxu1 %v215_v23  ;;  %p505_p5 = pnand %p504_p4, %p498_p1 }
  0x37   :  { %373 = vmatprep.subr.mxu0 %v528_v0  ;;  %404 = vmatprep.subr.mxu1 %v528_v0 }
  0x38   :  { %374 = vmatpush3.msra.mxu0 %v74_v9  ;;  %405 = vmatpush3.msra.mxu1 %v214_v24 }
  0x39   :  { %375 = vmatprep.subr.mxu0 %v528_v0  ;;  %406 = vmatprep.subr.mxu1 %v528_v0 }
  0x3a   :  { %376 = vmatpush3.msra.mxu0 %v73_v10  ;;  %407 = vmatpush3.msra.mxu1 %v213_v25 }
  0x3b   :  { %377 = vmatprep.subr.mxu0 %v528_v0  ;;  %408 = vmatprep.subr.mxu1 %v528_v0 }
  0x3c   :  { %378 = vmatpush3.msra.mxu0 %v72_v11  ;;  %409 = vmatpush3.msra.mxu1 %v212_v26 }
  0x3d   :  { %379 = vmatprep.subr.mxu0 %v528_v0  ;;  %410 = vmatprep.subr.mxu1 %v528_v0 }
  0x3e   :  { %380 = vmatpush3.msra.mxu0 %v71_v12  ;;  %411 = vmatpush3.msra.mxu1 %v211_v27 }
  0x3f   :  { %381 = vmatprep.subr.mxu0 %v528_v0  ;;  %412 = vmatprep.subr.mxu1 %v528_v0 }
  0x40   :  { %382 = vmatpush3.msra.mxu0 %v70_v13  ;;  %413 = vmatpush3.msra.mxu1 %v210_v28 }
  0x41   :  { %383 = vmatprep.subr.mxu0 %v528_v0  ;;  %414 = vmatprep.subr.mxu1 %v528_v0 }
  0x42   :  { %384 = vmatpush3.msra.mxu0 %v69_v14  ;;  %415 = vmatpush3.msra.mxu1 %v209_v29 }
  0x43   :  { %385 = vmatprep.subr.mxu0 %v528_v0  ;;  %416 = vmatprep.subr.mxu1 %v528_v0 }
  0x44   :  { %386 = vmatpush3.msra.mxu0 %v68_v15  ;;  %417 = vmatpush3.msra.mxu1 %v208_v30 }
  0x45   :  { %387 = vmatprep.subr.mxu0 %v528_v0  ;;  %418 = vmatprep.subr.mxu1 %v528_v0 }
  0x46   :  { %388 = vmatpush3.msra.mxu0 %v67_v16  ;;  %419 = vmatpush3.msra.mxu1 %v207_v31 }
  0x47   :  { %390 = vmatmul.mubr.f32.vlgmr.msra.gmra.mxu0 %v66_v17  ;;  %420 = vmatprep.subr.mxu1 %v528_v0 }
  0x48   :  { %421 = vmatpush3.msra.mxu1 %v206_v32 }
  0x49   :  { %422 = vmatprep.subr.mxu1 %v528_v0 }
  0x4a   :  { %423 = vmatpush3.msra.mxu1 %v205_v33 }
 0x107   :  { %v156_v37 = vpop.f32.mrf.mxu0 }
 0x108   :  { %v157_v39 = vadd.f32 %v318_v36, %v156_v37 }
 0x109   :  { %v391_v40 = vpop.f32.mrf.mxu0 }
 0x10a   :  { %v165_v41 = vmul.f32 %v319_v38, %v157_v39 }
 0x10c   :  { %v166_v42 = vrot.slane %v165_v41, 4 }
 0x10e   :  { %v167_v43 = vadd.f32 %v166_v42, %v165_v41 }
 0x110   :  { %v168_v44 = vrot.slane %v167_v43, 2 }
 0x112   :  { %v169_v45 = vadd.f32 %v168_v44, %v167_v43 }
 0x114   :  { %v170_v46 = vrot.slane %v169_v45, 1 }
 0x116   :  { %v171_v47 = vadd.f32 %v170_v46, %v169_v45 }
 0x118   :  { %v172_v48 = vmul.f32 0.16666667, %v171_v47 }
 0x11a   :  { %v173_v49 = vsub.f32 %v157_v39, %v172_v48 }
 0x11c   :  { %v174_v50 = vmul.f32 %v319_v38, %v173_v49 }
 0x11e   :  { %v175_v51 = vmul.f32 %v174_v50, %v174_v50 }
 0x120   :  { %v176_v52 = vrot.slane %v175_v51, 4 }
 0x122   :  { %v177_v53 = vadd.f32 %v176_v52, %v175_v51 }
 0x124   :  { %v178_v54 = vrot.slane %v177_v53, 2 }
 0x126   :  { %v179_v55 = vadd.f32 %v178_v54, %v177_v53 }
 0x128   :  { %v180_v56 = vrot.slane %v179_v55, 1 }
 0x12a   :  { %v181_v57 = vadd.f32 %v180_v56, %v179_v55 }
 0x12c   :  { %v182_v58 = vmul.f32 0.16666667, %v181_v57 }
 0x12e   :  { %v183_v59 = vadd.f32 0.8, %v182_v58 }
 0x130   :  { %435 = vrsqrt.f32 %v183_v59 }
 0x13d   :  { %v436_v60 = vpop.eup %435 }
 0x13e   :  { %v185_v62 = vmul.f32 %v436_v60, %v173_v49 }
 0x140   :  { %v193_v0 = vmul.f32 %v320_v61, %v185_v62 }
 0x142   :  { %v201_v1 = vadd.f32 %v321_v63, %v193_v0 }
 0x144   :  { %vm202_vm2 = vcmp.ge.f32.partialorder %v201_v1, 0.0  ;;  %v203_v2 = vmul.f32 0.2, %v201_v1 }
 0x146   :  { %v204_v3 = vsel %vm202_vm2, %v201_v1, %v203_v2 }
 0x147   :  { %425 = vmatmul.mubr.f32.vlgmr.msra.gmra.mxu1 %v204_v3 }
 0x207   :  { %v294_v5 = vpop.f32.mrf.mxu1 }
 0x208   :  { %v295_v6 = vadd.f32 %v322_v4, %v294_v5 }
 0x209   :  { %v426_v7 = vpop.f32.mrf.mxu1 }
 0x20a   :  { %v299_v8 = vmul.f32 0.2, %v295_v6  ;;  %vm298_vm3 = vcmp.ge.f32.partialorder %v295_v6, 0.0 }
 0x20c   :  { %v300_v9 = vsel %vm298_vm3, %v295_v6, %v299_v8 }
 0x20d   :  { %301 = vst [vmem:[#allocation8] sm:$0xff] %v300_v9 }
 0x20e   :  { %508 = shalt.err (!%p505_p5)
}
 0x20f   :  { %311 = dma.vmem_to_hbm [thread:$0]  %s309_s23, 128, %s637_s7, [#allocation4]  }
 0x210   :  { %521 = dma.done.wait [#allocation4], 128  }
 0x211   :  { %522 = vsyncadd [#allocation4], 4294967168 }
 0x212   :  { %315 = vsyncpa [#allocation3], 1 }
 0x213   :  { %316 = vsyncpa [#allocation6], 1 }
 0x214   :  { %317 = vsyncpa [#allocation4], 1 }

// kernel: tpu_custom_call.1
= control target key start
LH: loop header
LB: loop body
LE: loop exit
PB: predicated region body
PF: predicated region fallthrough
CT: control target
= control target key end

     0   :  { %12 = vsyncpa [#allocation3], 0  ;;  %s630_s0 = inlined_call_operand.hbm [shape: f32[8,128], index: 0, kind: input, shape index: {}]   ;;  %s631_s1 = inlined_call_operand.hbm [shape: f32[128,128], index: 1, kind: input, shape index: {}]   ;;  %s632_s2 = inlined_call_operand.vmem [shape: f32[1,128], index: 2, kind: input, shape index: {}]   ;;  %s633_s3 = inlined_call_operand.vmem [shape: f32[1,128], index: 3, kind: input, shape index: {}]   ;;  %s634_s4 = inlined_call_operand.vmem [shape: f32[1,128], index: 4, kind: input, shape index: {}]   ;;  %s635_s5 = inlined_call_operand.hbm [shape: f32[128,128], index: 5, kind: input, shape index: {}]   ;;  %s636_s6 = inlined_call_operand.vmem [shape: f32[1,128], index: 6, kind: input, shape index: {}]   ;;  %s637_s7 = inlined_call_operand.hbm [shape: f32[8,128], index: 7, kind: output, shape index: {}]  }
   0x1   :  { %13 = vsyncpa [#allocation6], 0 }
   0x2   :  { %14 = vsyncpa [#allocation4], 0  ;;  %s523_s24 = smov [#allocation5]  }
   0x3   :  { %s30_s25 = sshll.u32 %s523_s24, 4  ;;  %s31_s25 = int_to_ptr.vmem [resolvable:$true] %s30_s25 }
   0x4   :  { %s445_s26 = scalar_lea.vmem %s31_s25, 2048  ;;  %p450_p1 = scmp.lt.s32.totalorder %s31_s25, %s31_s25 }
   0x5   :  { %p446_p0 = scmp.ne.s32.totalorder %s31_s25, %s445_s26  ;;  %p451_p2 = scmp.lt.s32.totalorder %s445_s26, %s445_s26 }
   0x7   :  { %p452_p3 = por %p451_p2, %p450_p1 }
   0x9   :  { %p453_p4 = pnand %p452_p3, %p446_p0 }
   0xb   :  { %456 = shalt.err (!%p453_p4)
}
   0xc   :  { %s524_s27 = smov 128   ;;  %s525_s28 = smov 8  }
   0xd   :  { %36 = dma.hbm_to_vmem [thread:$0]  %s631_s1, 2048, %s31_s25, [#allocation6], %s524_s27, %s524_s27, %s525_s28  }
   0xe   :  { %s526_s8 = smov [#allocation2]   ;;  %s527_s10 = smov [#allocation7]  }
   0xf   :  { %s21_s9 = sshll.u32 %s526_s8, 4  ;;  %s48_s11 = sshll.u32 %s527_s10, 4  ;;  %s22_s9 = int_to_ptr.vmem [resolvable:$true] %s21_s9  ;;  %s49_s11 = int_to_ptr.vmem [resolvable:$true] %s48_s11 }
  0x10   :  { %s465_s12 = scalar_lea.vmem %s22_s9, 128  ;;  %p470_p6 = scmp.lt.s32.totalorder %s22_s9, %s22_s9 }
  0x11   :  { %p466_p5 = scmp.ne.s32.totalorder %s22_s9, %s465_s12  ;;  %p471_p7 = scmp.lt.s32.totalorder %s465_s12, %s465_s12 }
  0x13   :  { %p472_p8 = por %p471_p7, %p470_p6 }
  0x15   :  { %p473_p9 = pnand %p472_p8, %p466_p5 }
  0x17   :  { %476 = shalt.err (!%p473_p9)
}
  0x18   :  { %24 = dma.hbm_to_vmem [thread:$0]  %s630_s0, 128, %s22_s9, [#allocation3]  }
  0x19   :  { %s485_s15 = scalar_lea.vmem %s49_s11, 2048  ;;  %p490_p11 = scmp.lt.s32.totalorder %s49_s11, %s49_s11 }
  0x1a   :  { %p486_p10 = scmp.ne.s32.totalorder %s49_s11, %s485_s15  ;;  %p491_p12 = scmp.lt.s32.totalorder %s485_s15, %s485_s15 }
  0x1c   :  { %p492_p13 = por %p491_p12, %p490_p11 }
  0x1e   :  { %p493_p0 = pnand %p492_p13, %p486_p10 }
  0x20   :  { %496 = shalt.err (!%p493_p0)
}
  0x21   :  { %54 = dma.hbm_to_vmem [thread:$0]  %s635_s5, 2048, %s49_s11, [#allocation6], %s524_s27, %s524_s27, %s525_s28  }
  0x22   :  { %517 = dma.done.wait [#allocation3], 128  }
  0x23   :  { %518 = vsyncadd [#allocation3], 4294967168 }
  0x24   :  { %519 = dma.done.wait [#allocation6], 4096  }
  0x25   :  { %520 = vsyncadd [#allocation6], 4294963200  ;;  %v528_v0 = vmov 0.0   ;;  %vm529_vm0 = vmmov 0   ;;  %v82_v1 = vld [vmem:[#allocation5 + $0x78] sm:$0xff]  ;;  %v81_v2 = vld [vmem:[#allocation5 + $0x70] sm:$0xff]  ;;  %v160_v34 = vlaneseq }
  0x26   :  { %357 = vmatprep.subr.mxu0 %v528_v0  ;;  %389 = vmatprep.mubr.msk.f32.mxu0 %vm529_vm0, %v528_v0  ;;  %v80_v3 = vld [vmem:[#allocation5 + $0x68] sm:$0xff]  ;;  %v79_v4 = vld [vmem:[#allocation5 + $0x60] sm:$0xff]  ;;  %v78_v5 = vld [vmem:[#allocation5 + $0x58] sm:$0xff]  ;;  %s530_s22 = smov [#allocation8]  }
  0x27   :  { %392 = vmatprep.subr.mxu1 %v528_v0  ;;  %424 = vmatprep.mubr.msk.f32.mxu1 %vm529_vm0, %v528_v0  ;;  %v77_v6 = vld [vmem:[#allocation5 + $0x50] sm:$0xff]  ;;  %v76_v7 = vld [vmem:[#allocation5 + $0x48] sm:$0xff]  ;;  %v75_v8 = vld [vmem:[#allocation5 + $0x40] sm:$0xff]  ;;  %v161_v35 = vshrl.u32 %v160_v34, 7  ;;  %s308_s23 = sshll.u32 %s530_s22, 4  ;;  %s309_s23 = int_to_ptr.vmem [resolvable:$true] %s308_s23 }
  0x28   :  { %358 = vmatpush3.msra.mxu0 %v82_v1  ;;  %v74_v9 = vld [vmem:[#allocation5 + $0x38] sm:$0xff]  ;;  %v73_v10 = vld [vmem:[#allocation5 + $0x30] sm:$0xff]  ;;  %v72_v11 = vld [vmem:[#allocation5 + $0x28] sm:$0xff]  ;;  %p502_p2 = scmp.lt.s32.totalorder %s309_s23, %s309_s23 }
  0x29   :  { %359 = vmatprep.subr.mxu0 %v528_v0  ;;  %v71_v12 = vld [vmem:[#allocation5 + $0x20] sm:$0xff]  ;;  %v70_v13 = vld [vmem:[#allocation5 + $0x18] sm:$0xff]  ;;  %v69_v14 = vld [vmem:[#allocation5 + $0x10] sm:$0xff]  ;;  %vm162_vm1 = vcmp.lt.s32.totalorder %v161_v35, 6 }
  0x2a   :  { %360 = vmatpush3.msra.mxu0 %v81_v2  ;;  %v68_v15 = vld [vmem:[#allocation5 + $0x8] sm:$0xff]  ;;  %v67_v16 = vld [vmem:[#allocation5] sm:$0xff]  ;;  %v66_v17 = vld [vmem:[#allocation2] sm:$0xff]  ;;  %v319_v38 = vsel %vm162_vm1, 1.0, %v528_v0 }
  0x2b   :  { %361 = vmatprep.subr.mxu0 %v528_v0  ;;  %v220_v18 = vld [vmem:[#allocation7 + $0x78] sm:$0xff]  ;;  %v219_v19 = vld [vmem:[#allocation7 + $0x70] sm:$0xff]  ;;  %v218_v20 = vld [vmem:[#allocation7 + $0x68] sm:$0xff] }
  0x2c   :  { %362 = vmatpush3.msra.mxu0 %v80_v3  ;;  %393 = vmatpush3.msra.mxu1 %v220_v18  ;;  %v217_v21 = vld [vmem:[#allocation7 + $0x60] sm:$0xff]  ;;  %v216_v22 = vld [vmem:[#allocation7 + $0x58] sm:$0xff]  ;;  %v215_v23 = vld [vmem:[#allocation7 + $0x50] sm:$0xff] }
  0x2d   :  { %363 = vmatprep.subr.mxu0 %v528_v0  ;;  %394 = vmatprep.subr.mxu1 %v528_v0  ;;  %v214_v24 = vld [vmem:[#allocation7 + $0x48] sm:$0xff]  ;;  %v213_v25 = vld [vmem:[#allocation7 + $0x40] sm:$0xff]  ;;  %v212_v26 = vld [vmem:[#allocation7 + $0x38] sm:$0xff] }
  0x2e   :  { %364 = vmatpush3.msra.mxu0 %v79_v4  ;;  %395 = vmatpush3.msra.mxu1 %v219_v19  ;;  %v211_v27 = vld [vmem:[#allocation7 + $0x30] sm:$0xff]  ;;  %v210_v28 = vld [vmem:[#allocation7 + $0x28] sm:$0xff]  ;;  %v209_v29 = vld [vmem:[#allocation7 + $0x20] sm:$0xff] }
  0x2f   :  { %365 = vmatprep.subr.mxu0 %v528_v0  ;;  %396 = vmatprep.subr.mxu1 %v528_v0  ;;  %v208_v30 = vld [vmem:[#allocation7 + $0x18] sm:$0xff]  ;;  %v207_v31 = vld [vmem:[#allocation7 + $0x10] sm:$0xff]  ;;  %v206_v32 = vld [vmem:[#allocation7 + $0x8] sm:$0xff] }
  0x30   :  { %366 = vmatpush3.msra.mxu0 %v78_v5  ;;  %397 = vmatpush3.msra.mxu1 %v218_v20  ;;  %v205_v33 = vld [vmem:[#allocation7] sm:$0xff]  ;;  %v318_v36 = vld [vmem:[%s632_s2] ss:$0 sm:$0xff] }
  0x31   :  { %367 = vmatprep.subr.mxu0 %v528_v0  ;;  %398 = vmatprep.subr.mxu1 %v528_v0  ;;  %v320_v61 = vld [vmem:[%s633_s3] ss:$0 sm:$0xff]  ;;  %s497_s3 = scalar_lea.vmem %s309_s23, 128 }
  0x32   :  { %368 = vmatpush3.msra.mxu0 %v77_v6  ;;  %399 = vmatpush3.msra.mxu1 %v217_v21  ;;  %v321_v63 = vld [vmem:[%s634_s4] ss:$0 sm:$0xff]  ;;  %p498_p1 = scmp.ne.s32.totalorder %s309_s23, %s497_s3  ;;  %p503_p3 = scmp.lt.s32.totalorder %s497_s3, %s497_s3 }
  0x33   :  { %369 = vmatprep.subr.mxu0 %v528_v0  ;;  %400 = vmatprep.subr.mxu1 %v528_v0  ;;  %v322_v4 = vld [vmem:[%s636_s6] ss:$0 sm:$0xff] }
  0x34   :  { %370 = vmatpush3.msra.mxu0 %v76_v7  ;;  %401 = vmatpush3.msra.mxu1 %v216_v22  ;;  %p504_p4 = por %p503_p3, %p502_p2 }
  0x35   :  { %371 = vmatprep.subr.mxu0 %v528_v0  ;;  %402 = vmatprep.subr.mxu1 %v528_v0 }
  0x36   :  { %372 = vmatpush3.msra.mxu0 %v75_v8  ;;  %403 = vmatpush3.msra.mxu1 %v215_v23  ;;  %p505_p5 = pnand %p504_p4, %p498_p1 }
  0x37   :  { %373 = vmatprep.subr.mxu0 %v528_v0  ;;  %404 = vmatprep.subr.mxu1 %v528_v0 }
  0x38   :  { %374 = vmatpush3.msra.mxu0 %v74_v9  ;;  %405 = vmatpush3.msra.mxu1 %v214_v24 }
  0x39   :  { %375 = vmatprep.subr.mxu0 %v528_v0  ;;  %406 = vmatprep.subr.mxu1 %v528_v0 }
  0x3a   :  { %376 = vmatpush3.msra.mxu0 %v73_v10  ;;  %407 = vmatpush3.msra.mxu1 %v213_v25 }
  0x3b   :  { %377 = vmatprep.subr.mxu0 %v528_v0  ;;  %408 = vmatprep.subr.mxu1 %v528_v0 }
  0x3c   :  { %378 = vmatpush3.msra.mxu0 %v72_v11  ;;  %409 = vmatpush3.msra.mxu1 %v212_v26 }
  0x3d   :  { %379 = vmatprep.subr.mxu0 %v528_v0  ;;  %410 = vmatprep.subr.mxu1 %v528_v0 }
  0x3e   :  { %380 = vmatpush3.msra.mxu0 %v71_v12  ;;  %411 = vmatpush3.msra.mxu1 %v211_v27 }
  0x3f   :  { %381 = vmatprep.subr.mxu0 %v528_v0  ;;  %412 = vmatprep.subr.mxu1 %v528_v0 }
  0x40   :  { %382 = vmatpush3.msra.mxu0 %v70_v13  ;;  %413 = vmatpush3.msra.mxu1 %v210_v28 }
  0x41   :  { %383 = vmatprep.subr.mxu0 %v528_v0  ;;  %414 = vmatprep.subr.mxu1 %v528_v0 }
  0x42   :  { %384 = vmatpush3.msra.mxu0 %v69_v14  ;;  %415 = vmatpush3.msra.mxu1 %v209_v29 }
  0x43   :  { %385 = vmatprep.subr.mxu0 %v528_v0  ;;  %416 = vmatprep.subr.mxu1 %v528_v0 }
  0x44   :  { %386 = vmatpush3.msra.mxu0 %v68_v15  ;;  %417 = vmatpush3.msra.mxu1 %v208_v30 }
  0x45   :  { %387 = vmatprep.subr.mxu0 %v528_v0  ;;  %418 = vmatprep.subr.mxu1 %v528_v0 }
  0x46   :  { %388 = vmatpush3.msra.mxu0 %v67_v16  ;;  %419 = vmatpush3.msra.mxu1 %v207_v31 }
  0x47   :  { %390 = vmatmul.mubr.f32.vlgmr.msra.gmra.mxu0 %v66_v17  ;;  %420 = vmatprep.subr.mxu1 %v528_v0 }
  0x48   :  { %421 = vmatpush3.msra.mxu1 %v206_v32 }
  0x49   :  { %422 = vmatprep.subr.mxu1 %v528_v0 }
  0x4a   :  { %423 = vmatpush3.msra.mxu1 %v205_v33 }
 0x107   :  { %v156_v37 = vpop.f32.mrf.mxu0 }
 0x108   :  { %v157_v39 = vadd.f32 %v318_v36, %v156_v37 }
 0x109   :  { %v391_v40 = vpop.f32.mrf.mxu0 }
 0x10a   :  { %v165_v41 = vmul.f32 %v319_v38, %v157_v39 }
 0x10c   :  { %v166_v42 = vrot.slane %v165_v41, 4 }
 0x10e   :  { %v167_v43 = vadd.f32 %v166_v42, %v165_v41 }
 0x110   :  { %v168_v44 = vrot.slane %v167_v43, 2 }
 0x112   :  { %v169_v45 = vadd.f32 %v168_v44, %v167_v43 }
 0x114   :  { %v170_v46 = vrot.slane %v169_v45, 1 }
 0x116   :  { %v171_v47 = vadd.f32 %v170_v46, %v169_v45 }
 0x118   :  { %v172_v48 = vmul.f32 0.16666667, %v171_v47 }
 0x11a   :  { %v173_v49 = vsub.f32 %v157_v39, %v172_v48 }
 0x11c   :  { %v174_v50 = vmul.f32 %v319_v38, %v173_v49 }
 0x11e   :  { %v175_v51 = vmul.f32 %v174_v50, %v174_v50 }
 0x120   :  { %v176_v52 = vrot.slane %v175_v51, 4 }
 0x122   :  { %v177_v53 = vadd.f32 %v176_v52, %v175_v51 }
 0x124   :  { %v178_v54 = vrot.slane %v177_v53, 2 }
 0x126   :  { %v179_v55 = vadd.f32 %v178_v54, %v177_v53 }
 0x128   :  { %v180_v56 = vrot.slane %v179_v55, 1 }
 0x12a   :  { %v181_v57 = vadd.f32 %v180_v56, %v179_v55 }
 0x12c   :  { %v182_v58 = vmul.f32 0.16666667, %v181_v57 }
 0x12e   :  { %v183_v59 = vadd.f32 0.8, %v182_v58 }
 0x130   :  { %435 = vrsqrt.f32 %v183_v59 }
 0x13d   :  { %v436_v60 = vpop.eup %435 }
 0x13e   :  { %v185_v62 = vmul.f32 %v436_v60, %v173_v49 }
 0x140   :  { %v193_v0 = vmul.f32 %v320_v61, %v185_v62 }
 0x142   :  { %v201_v1 = vadd.f32 %v321_v63, %v193_v0 }
 0x144   :  { %vm202_vm2 = vcmp.ge.f32.partialorder %v201_v1, 0.0  ;;  %v203_v2 = vmul.f32 0.2, %v201_v1 }
 0x146   :  { %v204_v3 = vsel %vm202_vm2, %v201_v1, %v203_v2 }
 0x147   :  { %425 = vmatmul.mubr.f32.vlgmr.msra.gmra.mxu1 %v204_v3 }
 0x207   :  { %v294_v5 = vpop.f32.mrf.mxu1 }
 0x208   :  { %v295_v6 = vadd.f32 %v322_v4, %v294_v5 }
 0x209   :  { %v426_v7 = vpop.f32.mrf.mxu1 }
 0x20a   :  { %v299_v8 = vmul.f32 0.2, %v295_v6  ;;  %vm298_vm3 = vcmp.ge.f32.partialorder %v295_v6, 0.0 }
 0x20c   :  { %v300_v9 = vsel %vm298_vm3, %v295_v6, %v299_v8 }
 0x20d   :  { %301 = vst [vmem:[#allocation8] sm:$0xff] %v300_v9 }
 0x20e   :  { %508 = shalt.err (!%p505_p5)
}
 0x20f   :  { %311 = dma.vmem_to_hbm [thread:$0]  %s309_s23, 128, %s637_s7, [#allocation4]  }
 0x210   :  { %521 = dma.done.wait [#allocation4], 128  }
 0x211   :  { %522 = vsyncadd [#allocation4], 4294967168 }
 0x212   :  { %315 = vsyncpa [#allocation3], 1 }
 0x213   :  { %316 = vsyncpa [#allocation6], 1 }
 0x214   :  { %317 = vsyncpa [#allocation4], 1 }

</bundles_post_ra>
